<compile_context>
chip_gen: v7x
topology: tpu7x:2x2x1
jax: 0.10.0
libtpu: 0.0.40
codegen_flags: <defaults>
</compile_context>

<pallas_src>
import functools
import math

import jax
import jax.numpy as jnp
from jax.experimental import pallas as pl
from jax.experimental.pallas import tpu as pltpu


def _pos_enc_kernel(x_ref, o_ref, *, hidden_dim):
    # Block shapes: x_ref / o_ref are (1, TS, H).
    _, ts, h = x_ref.shape
    seq_tile = pl.program_id(1)

    # Per-feature quantities: a single (1, 1, H) row (exp over H elements only).
    j = jax.lax.broadcasted_iota(jnp.int32, (1, 1, h), dimension=2)
    even_j = (j & ~1).astype(jnp.float32)            # 2 * (j // 2), no int div
    inv_freq = jnp.exp(even_j * (-math.log(10000.0) / hidden_dim))
    # cos(x) == sin(x + pi/2): odd features get a pi/2 phase -> one EUP op/elem.
    phase = (j & 1).astype(jnp.float32) * (math.pi / 2.0)

    # Per-position column: (1, TS, 1), offset by this tile's start row.
    pos = (
        seq_tile * ts
        + jax.lax.broadcasted_iota(jnp.int32, (1, ts, 1), dimension=1)
    ).astype(jnp.float32)

    # Broadcast -> (1, TS, H) angles; single sin per element.
    pe = jnp.sin(pos * inv_freq + phase)

    # Add in f32, cast once at the store (exact for f32, precise for bf16).
    o_ref[...] = (x_ref[...].astype(jnp.float32) + pe).astype(o_ref.dtype)


def _pick_seq_tile(seq_len, hidden_dim, itemsize, target_bytes=2 * 1024 * 1024):
    """Pick a seq tile so one block stays ~2 MiB (fits v7x VMEM with in/out
    double-buffering + f32 temps) while keeping the last dim (H) full/lane-dense."""
    if seq_len * hidden_dim * itemsize <= target_bytes:
        return seq_len                      # whole sequence fits: one tile
    ts = (target_bytes // (hidden_dim * itemsize)) // 8 * 8
    ts = max(8, ts)
    return min(ts, seq_len)


def positional_encoding_add(x, hidden_dim, max_len, seq_tile=None):
    """x: (B, S, H) float array. Returns x + pe[:, :S, :] (PyTorch-equivalent)."""
    b, s, h = x.shape
    assert h == hidden_dim
    assert s <= max_len

    if seq_tile is None:
        seq_tile = _pick_seq_tile(s, h, jnp.dtype(x.dtype).itemsize)
    ts = min(seq_tile, s)
    # (8, 128) rule: second-to-last block dim must be a multiple of 8 or the
    # full extent; last dim is always the full H (lane-dense stores).
    if ts != s:
        ts = max(8, (ts // 8) * 8)
    num_seq_tiles = pl.cdiv(s, ts)

    kernel = functools.partial(_pos_enc_kernel, hidden_dim=hidden_dim)
    return pl.pallas_call(
        kernel,
        out_shape=jax.ShapeDtypeStruct((b, s, h), x.dtype),
        grid_spec=pltpu.PrefetchScalarGridSpec(
            num_scalar_prefetch=0,
            grid=(b, num_seq_tiles),
            in_specs=[pl.BlockSpec((1, ts, h), lambda bi, si: (bi, si, 0))],
            out_specs=pl.BlockSpec((1, ts, h), lambda bi, si: (bi, si, 0)),
        ),
        compiler_params=pltpu.CompilerParams(
            dimension_semantics=("parallel", "parallel"),
        ),
    )(x)


def positional_encoding_ref(x, hidden_dim, max_len):
    """Pure-JAX reference mirroring the PyTorch module."""
    position = jnp.arange(0, max_len, dtype=jnp.float32)[:, None]
    div_term = jnp.exp(
        jnp.arange(0, hidden_dim, 2, dtype=jnp.float32)
        * -(math.log(10000.0) / hidden_dim)
    )
    pe = jnp.zeros((max_len, hidden_dim), dtype=jnp.float32)
    pe = pe.at[:, 0::2].set(jnp.sin(position * div_term))
    pe = pe.at[:, 1::2].set(jnp.cos(position * div_term))
    pe = pe[None, :, :]
    _, s, _ = x.shape
    return (x.astype(jnp.float32) + pe[:, :s, :]).astype(x.dtype)


if __name__ == "__main__":
    key = jax.random.PRNGKey(0)

    # Small shapes implied by the module: batch=2, seq=8, hidden=32, max_len=16.
    batch, seq_len, hidden_dim, max_len = 2, 8, 32, 16
    x = jax.random.normal(key, (batch, seq_len, hidden_dim), dtype=jnp.float32)
    out = jax.block_until_ready(positional_encoding_add(x, hidden_dim, max_len))
    ref = positional_encoding_ref(x, hidden_dim, max_len)
    assert out.shape == (batch, seq_len, hidden_dim)
    assert jnp.allclose(out, ref, atol=1e-4, rtol=1e-5), "mismatch (small case)"

    # Exercise the seq-tiling path (multiple tiles + a partial last tile) to
    # verify the per-tile position offset is correct.
    batch2, seq_len2, hidden_dim2, max_len2 = 2, 200, 128, 256
    key2 = jax.random.PRNGKey(0)
    x2 = jax.random.normal(key2, (batch2, seq_len2, hidden_dim2), dtype=jnp.float32)
    out2 = jax.block_until_ready(
        positional_encoding_add(x2, hidden_dim2, max_len2, seq_tile=64)
    )
    ref2 = positional_encoding_ref(x2, hidden_dim2, max_len2)
    assert jnp.allclose(out2, ref2, atol=1e-4, rtol=1e-5), "mismatch (tiled case)"

    print("KERNEL_OK")
</pallas_src>

<mosaic_0001>
module attributes {stable_mosaic.version = 11 : i64} {
  func.func @_pos_enc_kernel(%arg0: i32, %arg1: i32, %arg2: memref<1x8x32xf32, #tpu.memory_space<vmem>>, %arg3: memref<1x8x32xf32, #tpu.memory_space<vmem>>) attributes {dimension_semantics = [#tpu.dimension_semantics<parallel>, #tpu.dimension_semantics<parallel>], iteration_bounds = array<i64: 2, 1>, scalar_prefetch = 0 : i64, scratch_operands = 0 : i64, tpu.core_type = #tpu.core_type<tc>, window_params = [{transform_indices = @transform_0, window_bounds = array<i64: 1, 8, 32>}, {transform_indices = @transform_1, window_bounds = array<i64: 1, 8, 32>}]} {
    %0 = tpu.iota {dimensions = array<i32: 2>} : vector<1x1x32xi32>
    %c-2_i32 = arith.constant -2 : i32
    %1 = vector.broadcast %c-2_i32 : i32 to vector<1x1x32xi32>
    %2 = arith.andi %0, %1 : vector<1x1x32xi32>
    %3 = arith.sitofp %2 : vector<1x1x32xi32> to vector<1x1x32xf32>
    %cst = arith.constant -0.287823141 : f32
    %4 = vector.broadcast %cst : f32 to vector<1x1x32xf32>
    %5 = arith.mulf %3, %4 : vector<1x1x32xf32>
    %6 = math.exp %5 : vector<1x1x32xf32>
    %c1_i32 = arith.constant 1 : i32
    %7 = vector.broadcast %c1_i32 : i32 to vector<1x1x32xi32>
    %8 = arith.andi %0, %7 : vector<1x1x32xi32>
    %9 = arith.sitofp %8 : vector<1x1x32xi32> to vector<1x1x32xf32>
    %cst_0 = arith.constant 1.57079637 : f32
    %10 = vector.broadcast %cst_0 : f32 to vector<1x1x32xf32>
    %11 = arith.mulf %9, %10 : vector<1x1x32xf32>
    %c8_i32 = arith.constant 8 : i32
    %12 = arith.muli %arg1, %c8_i32 : i32
    %13 = tpu.iota {dimensions = array<i32: 1>} : vector<1x8x1xi32>
    %14 = vector.broadcast %12 : i32 to vector<1x8x1xi32>
    %15 = arith.addi %14, %13 : vector<1x8x1xi32>
    %16 = arith.sitofp %15 : vector<1x8x1xi32> to vector<1x8x1xf32>
    %17 = vector.broadcast %16 : vector<1x8x1xf32> to vector<1x8x32xf32>
    %18 = vector.broadcast %6 : vector<1x1x32xf32> to vector<1x8x32xf32>
    %19 = arith.mulf %17, %18 : vector<1x8x32xf32>
    %20 = vector.broadcast %11 : vector<1x1x32xf32> to vector<1x8x32xf32>
    %21 = arith.addf %19, %20 : vector<1x8x32xf32>
    %22 = math.sin %21 : vector<1x8x32xf32>
    %c0 = arith.constant 0 : index
    %c0_1 = arith.constant 0 : index
    %c0_2 = arith.constant 0 : index
    %23 = vector.load %arg2[%c0, %c0_1, %c0_2] : memref<1x8x32xf32, #tpu.memory_space<vmem>>, vector<1x8x32xf32>
    %24 = arith.addf %23, %22 : vector<1x8x32xf32>
    %c0_3 = arith.constant 0 : index
    %c0_4 = arith.constant 0 : index
    %c0_5 = arith.constant 0 : index
    %25 = vector.load %arg3[%c0_3, %c0_4, %c0_5] : memref<1x8x32xf32, #tpu.memory_space<vmem>>, vector<1x8x32xf32>
    tpu.vector_store %arg3[%c0_3, %c0_4, %c0_5], %24 {strides = array<i32>} : memref<1x8x32xf32, #tpu.memory_space<vmem>>, vector<1x8x32xf32>,
    return
  }
  func.func @transform_0(%arg0: i32, %arg1: i32) -> (i32, i32, i32) {
    %c0_i32 = arith.constant 0 : i32
    %c0_i32_0 = arith.constant 0 : i32
    return %arg0, %arg1, %c0_i32 : i32, i32, i32
  }
  func.func @transform_1(%arg0: i32, %arg1: i32) -> (i32, i32, i32) {
    %c0_i32 = arith.constant 0 : i32
    %c0_i32_0 = arith.constant 0 : i32
    return %arg0, %arg1, %c0_i32 : i32, i32, i32
  }
}

</mosaic_0001>

<bundles_post_ra>
// kernel: tpu_custom_call.1
= control target key start
LH: loop header
LB: loop body
LE: loop exit
PB: predicated region body
PF: predicated region fallthrough
CT: control target
= control target key end

     0   :  { %6 = vsyncpa [#allocation3], 0  ;;  %s797_s0 = inlined_call_operand.hbm [shape: f32[2,8,32], index: 0, kind: input, shape index: {}]   ;;  %s798_s1 = inlined_call_operand.hbm [shape: f32[2,8,32], index: 1, kind: output, shape index: {}]  }
   0x1   :  { %8 = vsyncpa [#allocation3 + $0x1], 0 }
   0x2   :  { %9 = vsyncpa [#allocation4], 0 }
   0x3   :  { %11 = vsyncpa [#allocation4 + $0x1], 0  ;;  %s597_s6 = smov 0   ;;  %s599_s7 = smov 0  }
   0x4   :  { %s601_s8 = smov 0   ;;  %s603_s9 = smov 0  }
   0x5   :  { %s605_s10 = smov 0   ;;  %s607_s11 = smov 0  }
   0x6 LB: > { %s370_s12 = sadd.s32 4294967295, %s577_s11   ;;  %s371_s13 = sadd.s32 4294967294, %s577_s11   ;;  %s577_s11 = sphi %s607_s11, %s17_s11   ;;  %s573_s10 = sphi %s605_s10, %s814_s10   ;;  %s569_s9 = sphi %s603_s9, %s813_s9   ;;  %s565_s8 = sphi %s601_s8, %s812_s8   ;;  %s561_s7 = sphi %s599_s7, %s811_s7   ;;  %s557_s6 = sphi %s597_s6, %s810_s6  }
   0x7   : > { %s29_s14 = sadd.s32 1, %s573_s10  ;;  %s38_s15 = sadd.s32 1, %s565_s8 }
   0x8   : > { %p31_p0 = scmp.ge.s32.totalorder %s29_s14, 2  ;;  %p45_p1 = scmp.ne.s32.totalorder %s565_s8, %s561_s7 }
   0x9   : > { %p46_p2 = scmp.eq.s32.totalorder %s577_s11, 0  ;;  %p51_p3 = scmp.ne.s32.totalorder %s561_s7, %s557_s6 }
   0xa   : > { %s816_s14 = smov (%p31_p0, %s29_s14), 0  ;;  %p52_p5 = scmp.eq.s32.totalorder %s370_s12, 0 }
   0xb   : > { %p638_p4 = por %p46_p2, %p45_p1  ;;  %s33_s17 = ssub.s32 %s573_s10, %s816_s14 }
   0xc   : > { %p77_p6 = scmp.eq.s32.totalorder %s370_s12, 1  ;;  %p36_p7 = scmp.eq.s32.totalorder %s33_s17, 0 }
   0xd   : > { %p644_p8 = por %p52_p5, %p51_p3  ;;  %p83_p10 = scmp.eq.s32.totalorder %s371_s13, 1 }
   0xe   : > { %p648_p9 = por %p77_p6, %p45_p1  ;;  %p403_p13 = scmp.lt.s32.totalorder %s577_s11, 2 }
   0xf   : > { %s653_s20 = scalar_select %p36_p7, %s565_s8, %s38_s15  }
  0x10   : > { %s802_s19 = scalar_select %p648_p9, 1, 0 }
  0x11   : > { %p655_p11 = por %p83_p10, %p51_p3  ;;  %s103_s22 = sand.u32 1, %s565_s8  }
  0x12   : > { %s374_s23 = sshll.u32 %s103_s22, 3  ;;  %s375_s24 = sshll.u32 %s573_s10, 7 }
  0x13   : > { %s803_s21 = scalar_select %p655_p11, 1, 0 }
  0x14   : > { %s666_s27 = scalar_lea.hbm %s797_s0, %s375_s24  ;;  %s107_s28 = scalar_lea.vmem [#allocation2], %s374_s23 }
  0x15   : > { %s115_s29 = sshll.u32 %s107_s28, 4  ;;  %p672_p0 = pnand %p403_p13, %p638_p4  ;;  %s668_s29 = int_to_ptr.vmem [resolvable:$true] %s115_s29 }
  0x16   : > { %s104_s2 = scalar_lea.sflag [#allocation3], %s103_s22  ;;  %s465_s3 = scalar_lea.hbm %s666_s27, 128 }
  0x17   : > { %p466_p3 = scmp.ne.s32.totalorder %s666_s27, %s465_s3  ;;  %p467_p5 = pneg %p672_p0 }
  0x18   : > { %s470_s12 = scalar_lea.hbm %s797_s0, 256  ;;  %p471_p4 = scmp.lt.u32.totalorder %s666_s27, %s797_s0 }
  0x19   : > { %p468_p6 = pnand %p467_p5, %p466_p3  ;;  %p472_p10 = scmp.lt.u32.totalorder %s470_s12, %s465_s3 }
  0x1a   : > { %p474_p12 = scmp.lt.u32.totalorder %s465_s3, %s666_s27 }
  0x1b   : > { %p469_p7 = pneg %p468_p6  ;;  %p473_p13 = por %p472_p10, %p471_p4 }
  0x1d   : > { %p475_p1 = por %p474_p12, %p473_p13 }
  0x1f   : > { %p476_p2 = pnand %p475_p1, %p469_p7 }
  0x21   : > { %479 = shalt.err (!%p476_p2)
}
  0x22   : > { %s480_s16 = scalar_lea.vmem %s668_s29, 128  ;;  %s579_s17 = smov [#allocation2]  }
  0x23   : > { %p481_p3 = scmp.ne.s32.totalorder %s668_s29, %s480_s16  ;;  %s485_s22 = sshll.u32 %s579_s17, 4  ;;  %s486_s22 = int_to_ptr.vmem [resolvable:$false] %s485_s22 }
  0x24   : > { %s487_s23 = scalar_lea.vmem %s486_s22, 256  ;;  %p488_p9 = scmp.lt.s32.totalorder %s668_s29, %s486_s22 }
  0x25   : > { %p483_p6 = pnand %p481_p3, %p467_p5  ;;  %p489_p4 = scmp.lt.s32.totalorder %s487_s23, %s480_s16 }
  0x27   : > { %p484_p11 = pneg %p483_p6  ;;  %p490_p10 = por %p489_p4, %p488_p9 }
  0x29   : > { %p491_p12 = pnand %p490_p10, %p484_p11 }
  0x2b   : > { %494 = shalt.err (!%p491_p12)
}
  0x2c   : > { %398 = dma.hbm_to_vmem [thread:$0]  (!%p672_p0), %s666_s27, 128, %s668_s29, %s104_s2  }
  0x2d   : > { %p805_p1 = scmp.lt.s32.totalorder %s577_s11, 3  ;;  %p806_p2 = scmp.ge.s32.totalorder %s577_s11, 1 }
  0x2f   : > { %p121_p5 = pnand %p806_p2, %p805_p1 }
  0x30   : > { %s708_s24 = sand.u32 (!%p121_p5), 1, %s561_s7  }
  0x31   : > { %124 = sbr.rel (%p121_p5) target bundleno = 180 (0xb4), region = 24  ;;  %s377_s25 = sshll.u32 (!%p121_p5), %s708_s24, 3 }
  0x32   : > { %s127_s26 = scalar_lea.sflag (!%p121_p5), [#allocation3], %s708_s24  ;;  %s714_s28 = scalar_lea.vmem (!%p121_p5), [#allocation2], %s377_s25 }
  0x38   : > { %548 = dma.done.wait (%p644_p8), %s127_s26, 128  }
  0x39   : > { %550 = vsyncadd (%p644_p8), %s127_s26, 4294967168  ;;  %v149_v0 = vlaneseq  ;;  %v580_v25 = vmov 683565275   ;;  %v581_v27 = vmov 2475754826   ;;  %s148_s18 = scalar_lea.vmem [#allocation5], %s377_s25 }
  0x3a   : > { %v582_v29 = vmov 2131351028   ;;  %v583_v31 = vmov 2102212464   ;;  %v584_v33 = vmov 920167782  }
  0x3b   : > { %v150_v1 = vand.u32 127, %v149_v0  ;;  %v161_v7 = vshrl.u32 %v149_v0, 7  ;;  %v585_v40 = vmov 1326507024   ;;  %s290_s27 = sshll.u32 %s148_s18, 4  ;;  %s384_s29 = sshll.u32 %s569_s9, 7  ;;  %s745_s27 = int_to_ptr.vmem [resolvable:$true] %s290_s27 }
  0x3c   : > { %vm273_vm13 = vcmask 261120   ;;  %s750_s3 = scalar_lea.hbm %s798_s1, %s384_s29  ;;  %s276_s4 = scalar_lea.sflag [#allocation4], %s708_s24 }
  0x3d   : > { %v151_v2 = vand.u32 4294967294, %v150_v1  ;;  %v156_v6 = vand.u32 1, %v150_v1  ;;  %v164_v9 = vcvt.s32.f32 %v161_v7  ;;  %s495_s5 = scalar_lea.vmem %s745_s27, 128  ;;  %p807_p9 = scmp.ne.s32.totalorder %s802_s19, 0 }
  0x3e   : > { %p496_p8 = scmp.ne.s32.totalorder %s745_s27, %s495_s5  ;;  %s586_s9 = smov [#allocation5]  }
  0x3f   : > { %v152_v3 = vcvt.s32.f32 %v151_v2  ;;  %v157_v8 = vcvt.s32.f32 %v156_v6  ;;  %s499_s12 = sshll.u32 %s586_s9, 4  ;;  %s500_s12 = int_to_ptr.vmem [resolvable:$false] %s499_s12 }
  0x40   : > { %p497_p11 = pnand %p496_p8, %p807_p9  ;;  %s501_s13 = scalar_lea.vmem %s500_s12, 256 }
  0x41   : > { %v153_v4 = vmul.f32 -0.28782314, %v152_v3  ;;  %v158_v10 = vmul.f32 1.5707964, %v157_v8  ;;  %p502_p7 = scmp.lt.s32.totalorder %s745_s27, %s500_s12  ;;  %p503_p13 = scmp.lt.s32.totalorder %s501_s13, %s495_s5 }
  0x42   : > { %p498_p0 = pneg %p497_p11 }
  0x43   : > { %v154_v5 = vmul.f32 1.442695, %v153_v4  ;;  %p504_p3 = por %p503_p13, %p502_p7 }
  0x45   : > { %459 = vpow2.f32 %v154_v5  ;;  %p505_p6 = pnand %p504_p3, %p498_p0 }
  0x4f   : > { %v460_v11 = vpop.eup %459 }
  0x50   : > { %v165_v12 = vmul.f32 %v460_v11, %v164_v9 }
  0x52   : > { %v720_v13 = vadd.f32 %v165_v12, %v158_v10 }
  0x54   : > { %v170_v14 = vand.u32 2139095040, %v720_v13  ;;  %v167_v16 = vand.u32 2147483647, %v720_v13  ;;  %vm169_vm7 = vcmp.lt.s32.totalorder %v720_v13, 0  ;;  %vm259_vm12 = vweird.f32 %v720_v13 }
  0x56   : > { %v171_v15 = vshrl.u32 %v170_v14, 23  ;;  %v174_v19 = vand.u32 8388607, %v167_v16  ;;  %vm168_vm8 = vcmp.le.f32.partialorder %v167_v16, 0.7853982 }
  0x58   : > { %v379_v17 = vadd.s32 4294967169, %v171_v15  ;;  %v175_v22 = vor.u32 8388608, %v174_v19 }
  0x5a   : > { %v177_v18 = vadd.s32 1, %v379_v17  ;;  %v215_v42 = vshll.u32 %v175_v22, 8 }
  0x5c   : > { %vm178_vm0 = vcmp.gt.s32.totalorder %v177_v18, 0 }
  0x5d   : > { %v179_v20 = vsel %vm178_vm0, %v177_v18, 0 }
  0x5e   : > { %v181_v21 = vand.u32 31, %v179_v20  ;;  %v180_v23 = vshrl.u32 %v179_v20, 5 }
  0x60   : > { %v182_v24 = vsub.s32 32, %v181_v21  ;;  %v184_v26 = vshll.u32 %v580_v25, %v181_v21  ;;  %v187_v28 = vshll.u32 %v581_v27, %v181_v21  ;;  %v190_v30 = vshll.u32 %v582_v29, %v181_v21 }
  0x61   : > { %v193_v32 = vshll.u32 %v583_v31, %v181_v21  ;;  %v196_v34 = vshll.u32 %v584_v33, %v181_v21  ;;  %vm199_vm1 = vcmp.lt.s32.totalorder %v180_v23, 1  ;;  %vm202_vm2 = vcmp.lt.s32.totalorder %v180_v23, 4 }
  0x62   : > { %v183_v35 = vshrl.u32 %v580_v25, %v182_v24  ;;  %v185_v36 = vshrl.u32 %v581_v27, %v182_v24  ;;  %v188_v37 = vshrl.u32 %v582_v29, %v182_v24  ;;  %v191_v38 = vshrl.u32 %v583_v31, %v182_v24 }
  0x63   : > { %v194_v39 = vshrl.u32 %v584_v33, %v182_v24  ;;  %v197_v41 = vshrl.u32 %v585_v40, %v182_v24  ;;  %vm200_vm3 = vcmp.lt.s32.totalorder %v180_v23, 2  ;;  %vm201_vm4 = vcmp.lt.s32.totalorder %v180_v23, 3  ;;  %v271_v40 = vld [vmem:[%s714_s28] sm:$0xff] }
  0x64   : > { %v186_v43 = vor.u32 %v185_v36, %v184_v26  ;;  %v189_v44 = vor.u32 %v188_v37, %v187_v28  ;;  %v192_v45 = vor.u32 %v191_v38, %v190_v30 }
  0x65   : > { %v195_v46 = vor.u32 %v194_v39, %v193_v32  ;;  %v198_v47 = vor.u32 %v197_v41, %v196_v34 }
  0x66   : > { %v203_v48 = vsel %vm199_vm1, %v183_v35, %v186_v43  ;;  %v204_v49 = vsel %vm202_vm2, %v192_v45, 2102212464  ;;  %v207_v50 = vsel %vm199_vm1, %v186_v43, %v189_v44  ;;  %v211_v51 = vsel %vm199_vm1, %v189_v44, %v192_v45 }
  0x67   : > { %v205_v52 = vsel %vm201_vm4, %v189_v44, %v204_v49  ;;  %v208_v53 = vsel %vm202_vm2, %v195_v46, 920167782  ;;  %v212_v54 = vsel %vm202_vm2, %v198_v47, 1326507024 }
  0x68   : > { %v209_v55 = vsel %vm201_vm4, %v192_v45, %v208_v53  ;;  %v213_v56 = vsel %vm201_vm4, %v195_v46, %v212_v54  ;;  %v206_v57 = vsel %vm200_vm3, %v203_v48, %v205_v52 }
  0x69   : > { %v210_v58 = vsel %vm200_vm3, %v207_v50, %v209_v55  ;;  %v214_v59 = vsel %vm200_vm3, %v211_v51, %v213_v56  ;;  %v222_v0 = vmul.u32 %v215_v42, %v206_v57 }
  0x6a   : > { %v726_v60 = vmul.u32.u64.low %v215_v42, %v214_v59  ;;  %v727_v61 = vmul.u32.u64.high %v215_v42, %v214_v59, %v726_v60  ;;  %v729_v62 = vmul.u32.u64.low %v215_v42, %v210_v58  ;;  %v730_v63 = vmul.u32.u64.high %v215_v42, %v210_v58, %v729_v62 }
  0x6c   : > { %vm224_vm5 = vc.u32 %v727_v61, %v729_v62  ;;  %v225_v1 = vadd.s32 1, %v730_v63  ;;  %v223_v12 = vadd.s32 %v729_v62, %v727_v61 }
  0x6e   : > { %v226_v2 = vsel %vm224_vm5, %v225_v1, %v730_v63 }
  0x6f   : > { %v227_v3 = vadd.s32 %v226_v2, %v222_v0 }
  0x71   : > { %v228_v4 = vadd.s32 536870912, %v227_v3 }
  0x73   : > { %v229_v5 = vshrl.u32 %v228_v4, 30 }
  0x75   : > { %v230_v6 = vshll.u32 %v229_v5, 30  ;;  %v253_v26 = vsub.s32 4, %v229_v5 }
  0x77   : > { %v231_v7 = vsub.s32 %v227_v3, %v230_v6  ;;  %v254_v29 = vsel %vm169_vm7, %v253_v26, %v229_v5 }
  0x78   : > { %v256_v32 = vsel %vm168_vm8, 0, %v254_v29 }
  0x79   : > { %v233_v8 = vsub.s32 0, %v231_v7  ;;  %v260_v33 = vadd.s32 3, %v256_v32 }
  0x7b   : > { %v380_v9 = vmin.u32 %v233_v8, %v231_v7  ;;  %v261_v34 = vand.u32 3, %v260_v33 }
  0x7d   : > { %v235_v10 = vclz %v380_v9  ;;  %vm266_vm9 = vcmp.eq.s32.totalorder %v261_v34, 2  ;;  %vm263_vm10 = vcmp.eq.s32.totalorder %v261_v34, 0  ;;  %vm262_vm11 = vcmp.lt.s32.totalorder %v261_v34, 2 }
  0x7f   : > { %v381_v11 = vadd.s32 4294967294, %v235_v10 }
  0x81   : > { %vm382_vm6 = vcmp.lt.s32.totalorder %v381_v11, 0 }
  0x82   : > { %v238_v14 = vsel %vm382_vm6, 0, %v381_v11 }
  0x83   : > { %v239_v15 = vsub.s32 32, %v238_v14  ;;  %v240_v17 = vshll.u32 %v231_v7, %v238_v14  ;;  %v243_v18 = vsub.s32 4294967266, %v238_v14 }
  0x85   : > { %v241_v19 = vshrl.u32 %v223_v12, %v239_v15  ;;  %v244_v20 = vadd.s32 127, %v243_v18 }
  0x87   : > { %v242_v21 = vor.u32 %v241_v19, %v240_v17  ;;  %v245_v22 = vshll.u32 %v244_v20, 23 }
  0x89   : > { %v246_v23 = vor.u32 4788187, %v245_v22  ;;  %v249_v24 = vcvt.s32.f32 %v242_v21 }
  0x8b   : > { %v247_v25 = vand.u32 2147483647, %v246_v23 }
  0x8d   : > { %v250_v27 = vmul.f32 %v249_v24, %v247_v25 }
  0x8f   : > { %v251_v28 = vxor.u32 2147483648, %v250_v27 }
  0x91   : > { %v252_v30 = vsel %vm169_vm7, %v251_v28, %v250_v27 }
  0x92   : > { %v255_v31 = vsel %vm168_vm8, %v720_v13, %v252_v30 }
  0x93   : > { %461 = vcosq.f32 %v255_v31 }
  0x94   : > { %463 = vsinq.f32 %v255_v31 }
  0x9d   : > { %v462_v35 = vpop.eup %461 }
  0x9e   : > { %v464_v36 = vpop.eup %463  ;;  %v267_v37 = vxor.u32 2147483648, %v462_v35 }
  0x9f   : > { %v264_v16 = vxor.u32 2147483648, %v464_v36 }
  0xa0   : > { %v268_v38 = vsel %vm266_vm9, %v267_v37, %v464_v36 }
  0xa1   : > { %v265_v39 = vsel %vm263_vm10, %v462_v35, %v264_v16 }
  0xa2   : > { %v269_v41 = vsel %vm262_vm11, %v265_v39, %v268_v38 }
  0xa3   : > { %v270_v42 = vsel %vm259_vm12, nan, %v269_v41 }
  0xa4   : > { %v272_v43 = vadd.f32 %v271_v40, %v270_v42 }
  0xa6   : > { %274 = vst.msk [vmem:[%s148_s18] sm:$0xff] %vm273_vm13, %v272_v43 }
  0xa7   : > { %508 = shalt.err (!%p505_p6)
}
  0xa8   : > { %s509_s15 = scalar_lea.hbm %s750_s3, 128  ;;  %s513_s22 = scalar_lea.hbm %s798_s1, 256 }
  0xa9   : > { %p510_p4 = scmp.ne.s32.totalorder %s750_s3, %s509_s15  ;;  %p514_p1 = scmp.lt.u32.totalorder %s750_s3, %s798_s1 }
  0xaa   : > { %p515_p2 = scmp.lt.u32.totalorder %s513_s22, %s509_s15  ;;  %p517_p8 = scmp.lt.u32.totalorder %s509_s15, %s750_s3 }
  0xab   : > { %p511_p10 = pnand %p510_p4, %p807_p9 }
  0xac   : > { %p516_p5 = por %p515_p2, %p514_p1 }
  0xad   : > { %p512_p12 = pneg %p511_p10 }
  0xae   : > { %p518_p11 = por %p517_p8, %p516_p5 }
  0xb0   : > { %p519_p0 = pnand %p518_p11, %p512_p12 }
  0xb2   : > { %522 = shalt.err (!%p519_p0)
}
  0xb3   : > { %393 = dma.vmem_to_hbm [thread:$0]  (%p807_p9), %s745_s27, 128, %s750_s3, %s276_s4  }
  0xb4 PF: > { %s302_s25 = sand.u32 1, %s557_s6   ;;  %p808_p7 = scmp.ne.s32.totalorder %s803_s21, 0 }
  0xb5   : > { %p809_p13 = scmp.ge.s32.totalorder %s577_s11, 2  ;;  %s303_s26 = scalar_lea.sflag [#allocation4], %s302_s25 }
  0xb7   : > { %p400_p3 = pnand %p809_p13, %p808_p7 }
  0xb9   : > { %552 = dma.done.wait (!%p400_p3), %s303_s26, 128  }
  0xba   : > { %554 = vsyncadd (!%p400_p3), %s303_s26, 4294967168  ;;  %s17_s11 = sadd.s32 1, %s577_s11   ;;  %s810_s6 = smov %s561_s7 }
  0xbb   : > { %p14_p6 = scmp.ge.s32.totalorder %s17_s11, 4   ;;  %s811_s7 = smov %s565_s8 }
  0xbc   : > { %s812_s8 = smov %s653_s20  ;;  %s813_s9 = smov %s573_s10 }
  0xbd   : > { %s814_s10 = smov %s816_s14  ;;  %16 = sbr.rel (!%p14_p6) target bundleno = 6 (0x6), region = 69 }
  0xc4   :  { %308 = vsyncpa [#allocation3], 1 }
  0xc5   :  { %310 = vsyncpa [#allocation3 + $0x1], 1 }
  0xc6   :  { %311 = vsyncpa [#allocation4], 1 }
  0xc7   :  { %313 = vsyncpa [#allocation4 + $0x1], 1 }

</bundles_post_ra>
